<compile_context>
chip_gen: v5e
topology: v5e:2x2
jax: 0.10.0
libtpu: 0.0.40
codegen_flags: <defaults>
</compile_context>

<pallas_src>
import jax
import jax.numpy as jnp
from jax.experimental import pallas as pl
from jax.experimental.pallas import tpu as pltpu


# ---------------------------------------------------------------------------
# Kernel
# ---------------------------------------------------------------------------
def _ffn_kernel(x_ref, w13_ref, w2_ref, o_ref, acc_ref):
    # Grid: (hidden-split c, M-tile i, hidden-block h)   -- h is innermost.
    # x_ref:   (tm, dim)       token tile (original dtype; cast in-kernel)
    # w13_ref: (dim, 2*th)     bf16 fused [W1 | W3] slice for this hidden block
    # w2_ref:  (th, dim)       bf16 W2 slice for this hidden block
    # o_ref:   (tm, dim)       (partial) output tile, written at the last h
    # acc_ref: (tm, dim) f32   VMEM accumulator, resident across the h axis
    h = pl.program_id(2)

    @pl.when(h == 0)
    def _():
        acc_ref[...] = jnp.zeros_like(acc_ref)

    # In-kernel bf16 cast (avoids an extra XLA pass over activations in HBM).
    x = x_ref[...].astype(w13_ref.dtype)

    # Fused first-stage matmul on the MXU: (tm, dim) @ (dim, 2*th) -> (tm, 2*th)
    h13 = jnp.dot(x, w13_ref[...], preferred_element_type=jnp.float32)
    th = h13.shape[-1] // 2
    h1 = h13[:, :th]
    h3 = h13[:, th:]

    # SwiGLU gate in f32 (sigmoid on the EUP, mul on the VPU).
    gated = (h1 * jax.nn.sigmoid(h1)) * h3

    # Second-stage matmul, accumulated over hidden blocks in f32.
    acc_ref[...] += jnp.dot(gated.astype(w2_ref.dtype), w2_ref[...],
                            preferred_element_type=jnp.float32)

    @pl.when(h == pl.num_programs(2) - 1)
    def _():
        o_ref[...] = acc_ref[...].astype(o_ref.dtype)


# ---------------------------------------------------------------------------
# Helpers
# ---------------------------------------------------------------------------
def llama_hidden_dim(dim: int, hidden_dim: int, multiple_of: int,
                     ffn_dim_multiplier=None) -> int:
    hidden_dim = int(2 * hidden_dim / 3)
    if ffn_dim_multiplier is not None:
        hidden_dim = int(ffn_dim_multiplier * hidden_dim)
    hidden_dim = multiple_of * ((hidden_dim + multiple_of - 1) // multiple_of)
    return hidden_dim


def _round_up(x: int, m: int) -> int:
    return ((x + m - 1) // m) * m


def _vmem_capacity_bytes() -> int:
    """Physical VMEM per TensorCore; conservative fallback if query fails."""
    kind = _device_kind()
    try:
        cap = int(pltpu.get_tpu_info().vmem_capacity_bytes)
        if cap > 0:
            return cap
    except Exception:
        pass
    if "v5" in kind or "v6" in kind:
        return 128 * 1024 * 1024
    return 64 * 1024 * 1024          # v7x / unknown: assume the small one


def _device_kind() -> str:
    try:
        return jax.devices()[0].device_kind.lower()
    except Exception:
        return ""


def pick_hidden_tile(hidden: int, dim: int, vmem_cap: int) -> int:
    """Largest lane-friendly (multiple-of-128) hidden tile dividing `hidden`
    whose double-buffered weight slices (w13 + w2, bf16, x2 buffers =
    12*th*dim bytes) fit in roughly half the chip's VMEM."""
    weight_budget = vmem_cap // 2
    for cand in (1024, 512, 256, 128):
        if cand <= hidden and hidden % cand == 0 and 12 * cand * dim <= weight_budget:
            return cand
    return hidden                     # single full-width block fallback


def _pick_tm(M: int, dim: int, x_bytes: int, out_bytes: int,
             weight_vmem: int, vmem_cap: int, device_kind: str) -> int:
    """Generation-aware M tile: big enough to hide re-streamed weight DMA
    behind the MXU (tm >= ~peak_FLOPs/HBM_BW), shrunk only if VMEM demands."""
    if "v6" in device_kind:
        base = 1024                   # needs ~656 rows to be compute-bound
    elif "v5" in device_kind:
        base = 512
    else:                             # v7x / unknown: 64 MiB VMEM, fast HBM
        base = 512
    tm = min(base, _round_up(max(M, 1), 16))     # bf16 sublane packing: x16
    budget = (vmem_cap * 7) // 8
    act = lambda t: t * dim * (2 * x_bytes + 2 * out_bytes + 4)  # x/out dbl-buf + f32 acc
    while tm > 16 and act(tm) + weight_vmem > budget:
        tm = _round_up(max(16, tm // 2), 16)
    return tm


def prepare_ffn_weights(w1, w2, w3, *, th: int, dtype=jnp.bfloat16):
    """One-time weight prep (do NOT repeat per forward call).

    w1, w3: (hidden, dim)  w2: (dim, hidden)   -- PyTorch nn.Linear layout.
    Returns:
      w13:  (dim, 2*hidden) bf16, blocked so hidden-block h occupies columns
            [h*2*th : (h+1)*2*th] = [W1 cols of block h | W3 cols of block h].
      w2_t: (hidden, dim)   bf16, row-major (in, out).
    NOTE: `th` here must match the `th` passed to ffn_forward.
    """
    hidden, dim = w1.shape
    assert hidden % th == 0
    nh = hidden // th
    w1_t = w1.T.astype(dtype)                                  # (dim, hidden)
    w3_t = w3.T.astype(dtype)                                  # (dim, hidden)
    w13 = jnp.concatenate(
        [w1_t.reshape(dim, nh, th), w3_t.reshape(dim, nh, th)],
        axis=-1,
    ).reshape(dim, 2 * hidden)
    w2_t = w2.T.astype(dtype)                                  # (hidden, dim)
    return w13, w2_t


# ---------------------------------------------------------------------------
# Forward wrapper
# ---------------------------------------------------------------------------
def ffn_forward(x, w13, w2_t, *, tm=None, th=None, hidden_splits=None,
                out_dtype=None):
    """x: (B, S, dim); w13/w2_t from prepare_ffn_weights(..., th=th)."""
    B, S, dim = x.shape
    hidden = w2_t.shape[0]
    assert w13.shape == (dim, 2 * hidden)
    out_dtype = x.dtype if out_dtype is None else out_dtype

    M = B * S
    vmem_cap = _vmem_capacity_bytes()
    kind = _device_kind()

    if th is None:
        th = pick_hidden_tile(hidden, dim, vmem_cap)
    assert hidden % th == 0
    nh = hidden // th

    x_bytes = jnp.dtype(x.dtype).itemsize
    w_bytes = jnp.dtype(w13.dtype).itemsize
    out_bytes = jnp.dtype(out_dtype).itemsize
    weight_vmem = 2 * (dim * 2 * th + th * dim) * w_bytes   # dbl-buffered weights

    if tm is None:
        tm = _pick_tm(M, dim, x_bytes, out_bytes, weight_vmem, vmem_cap, kind)
    assert tm % 8 == 0, "tm must be a multiple of 8 (prefer 16 for bf16)"

    M_pad = _round_up(M, tm)
    m_tiles = M_pad // tm

    # Decode-shaped calls on v7x: split the hidden axis over a leading
    # "parallel" grid axis so both TensorCores get work; partials summed
    # outside the kernel.
    if hidden_splits is None:
        hidden_splits = 2 if ("v7" in kind and m_tiles == 1
                              and nh >= 2 and nh % 2 == 0) else 1
    n_split = hidden_splits
    assert nh % n_split == 0
    nh_ps = nh // n_split

    partial_dtype = jnp.float32 if n_split > 1 else out_dtype
    part_bytes = jnp.dtype(partial_dtype).itemsize

    # Activations go in as-is (bf16 cast happens in-kernel); only pad if needed.
    x2d = x.reshape(M, dim)
    if M_pad != M:
        x2d = jnp.pad(x2d, ((0, M_pad - M), (0, 0)))

    # Advisory cost for XLA scheduling: weights are re-streamed once per M tile.
    weight_hbm = (w13.size + w2_t.size) * w_bytes
    cost = pl.CostEstimate(
        flops=6 * M_pad * dim * hidden,
        transcendentals=M_pad * hidden,
        bytes_accessed=int(n_split * M_pad * dim * x_bytes
                           + m_tiles * weight_hbm
                           + n_split * M_pad * dim * part_bytes),
    )

    # VMEM budget: double-buffered x / weights / out blocks + f32 accumulator,
    # with ~25% headroom, clamped to 7/8 of physical VMEM (v7x: 64 MiB).
    vmem_est = (2 * tm * dim * x_bytes
                + weight_vmem
                + 2 * tm * dim * part_bytes
                + tm * dim * 4)
    vmem_limit = int(min(max(vmem_est * 5 // 4, 16 * 1024 * 1024),
                         (vmem_cap * 7) // 8))

    grid = (n_split, m_tiles, nh_ps)

    # NOTE(v5e/v6e): if profiles show exposed weight DMA at the start of each
    # M tile's hidden loop, add pipeline_mode=pl.Buffered(3) on the two weight
    # BlockSpecs (128 MiB VMEM affords it); do NOT on v7x.
    out_parts = pl.pallas_call(
        _ffn_kernel,
        out_shape=jax.ShapeDtypeStruct((n_split, M_pad, dim), partial_dtype),
        grid_spec=pltpu.PrefetchScalarGridSpec(
            num_scalar_prefetch=0,
            grid=grid,
            in_specs=[
                pl.BlockSpec((tm, dim), lambda c, i, h: (i, 0)),          # x tile
                pl.BlockSpec((dim, 2 * th),
                             lambda c, i, h: (0, c * nh_ps + h)),         # fused W1|W3
                pl.BlockSpec((th, dim),
                             lambda c, i, h: (c * nh_ps + h, 0)),         # W2 slice
            ],
            out_specs=pl.BlockSpec((None, tm, dim), lambda c, i, h: (c, i, 0)),
            scratch_shapes=[pltpu.VMEM((tm, dim), jnp.float32)],
        ),
        compiler_params=pltpu.CompilerParams(
            dimension_semantics=("parallel", "parallel", "arbitrary"),
            vmem_limit_bytes=vmem_limit,
        ),
        cost_estimate=cost,
    )(x2d, w13, w2_t)

    if n_split > 1:
        out2d = jnp.sum(out_parts, axis=0).astype(out_dtype)
    else:
        out2d = out_parts[0]
    if M_pad != M:
        out2d = out2d[:M]
    return out2d.reshape(B, S, dim)


def feed_forward(x, w1, w2, w3, *, tm=None, th=None, hidden_splits=None):
    """Convenience wrapper taking PyTorch-layout weights.

    Weight prep (transpose/fuse/cast) should be done ONCE at model init in
    real use; this wrapper redoes it per call for self-containment only.
    """
    hidden, dim = w1.shape
    if th is None:
        th = pick_hidden_tile(hidden, dim, _vmem_capacity_bytes())
    w13, w2_t = prepare_ffn_weights(w1, w2, w3, th=th, dtype=jnp.bfloat16)
    return ffn_forward(x, w13, w2_t, tm=tm, th=th, hidden_splits=hidden_splits)


# ---------------------------------------------------------------------------
# Test
# ---------------------------------------------------------------------------
if __name__ == "__main__":
    f32 = jnp.float32

    def ref_ffn(x, w1, w2, w3):
        # Pure-JAX reference with matching numerics (bf16 matmuls, f32 gate/acc).
        bf16 = jnp.bfloat16
        B, S, dim = x.shape
        x2d = x.reshape(-1, dim).astype(bf16)
        h1 = jnp.dot(x2d, w1.T.astype(bf16), preferred_element_type=f32)
        h3 = jnp.dot(x2d, w3.T.astype(bf16), preferred_element_type=f32)
        gated = (h1 * jax.nn.sigmoid(h1)) * h3
        out = jnp.dot(gated.astype(bf16), w2.T.astype(bf16),
                      preferred_element_type=f32)
        return out.reshape(B, S, dim).astype(x.dtype)

    def make_inputs(batch, seq, dim, hidden, seed):
        key = jax.random.PRNGKey(seed)
        kx, k1, k2, k3 = jax.random.split(key, 4)
        x = jax.random.normal(kx, (batch, seq, dim), dtype=f32)
        # nn.Linear weight layout: (out_features, in_features), bias=False.
        w1 = jax.random.normal(k1, (hidden, dim), dtype=f32) * 0.02
        w2 = jax.random.normal(k2, (dim, hidden), dtype=f32) * 0.02
        w3 = jax.random.normal(k3, (hidden, dim), dtype=f32) * 0.02
        return x, w1, w2, w3

    # Module config (small but TPU-tile-friendly).
    dim = 128
    hidden = llama_hidden_dim(dim, 256, 128, None)          # -> 256

    # (batch, seq, tm, th, hidden_splits) -- exercise distinct code paths:
    cases = [
        (2, 8, None, None, None),   # default tile selection, single tile
        (2, 9, 16, 128, 1),         # nh=2 accumulation, M=18 padded to 32, 2 M tiles
        (1, 8, None, 128, 2),       # decode-shaped: hidden-split path (partial sums)
    ]
    for i, (batch, seq, tm, th, splits) in enumerate(cases):
        x, w1, w2, w3 = make_inputs(batch, seq, dim, hidden, seed=i)
        t = th if th is not None else pick_hidden_tile(hidden, dim,
                                                       _vmem_capacity_bytes())
        # One-time weight preparation (outside the forward path in real use).
        w13, w2_t = prepare_ffn_weights(w1, w2, w3, th=t)
        out = ffn_forward(x, w13, w2_t, tm=tm, th=t, hidden_splits=splits)
        out = jax.block_until_ready(out)
        ref = ref_ffn(x, w1, w2, w3)
        assert out.shape == ref.shape, f"case {i}: shape mismatch"
        assert jnp.allclose(out.astype(f32), ref.astype(f32),
                            atol=3e-3, rtol=3e-3), f"case {i}: mismatch vs reference"

    print("KERNEL_OK")
</pallas_src>

<mosaic_0001>
module attributes {stable_mosaic.version = 11 : i64} {
  func.func @_ffn_kernel(%arg0: i32, %arg1: i32, %arg2: i32, %arg3: memref<16x128xf32, #tpu.memory_space<vmem>>, %arg4: memref<128x512xbf16, #tpu.memory_space<vmem>>, %arg5: memref<256x128xbf16, #tpu.memory_space<vmem>>, %arg6: memref<1x16x128xf32, #tpu.memory_space<vmem>>, %arg7: memref<16x128xf32, #tpu.memory_space<vmem>>) attributes {dimension_semantics = [#tpu.dimension_semantics<parallel>, #tpu.dimension_semantics<parallel>, #tpu.dimension_semantics<arbitrary>], iteration_bounds = array<i64: 1, 1, 1>, scalar_prefetch = 0 : i64, scratch_operands = 1 : i64, tpu.core_type = #tpu.core_type<tc>, window_params = [{transform_indices = @transform_0, window_bounds = array<i64: 16, 128>}, {transform_indices = @transform_1, window_bounds = array<i64: 128, 512>}, {transform_indices = @transform_2, window_bounds = array<i64: 256, 128>}, {transform_indices = @transform_3, window_bounds = array<i64: 1, 16, 128>}]} {
    %c0_i32 = arith.constant 0 : i32
    %0 = arith.cmpi eq, %arg2, %c0_i32 : i32
    %1 = arith.extui %0 : i1 to i32
    %c0_i32_0 = arith.constant 0 : i32
    %2 = arith.cmpi ne, %1, %c0_i32_0 : i32
    scf.if %2 {
      %cst_14 = arith.constant 0.000000e+00 : f32
      %25 = vector.broadcast %cst_14 : f32 to vector<16x128xf32>
      %c0_15 = arith.constant 0 : index
      %c0_16 = arith.constant 0 : index
      %26 = vector.load %arg7[%c0_15, %c0_16] : memref<16x128xf32, #tpu.memory_space<vmem>>, vector<16x128xf32>
      tpu.vector_store %arg7[%c0_15, %c0_16], %25 {strides = array<i32>} : memref<16x128xf32, #tpu.memory_space<vmem>>, vector<16x128xf32>,
    } else {
    }
    %c0 = arith.constant 0 : index
    %c0_1 = arith.constant 0 : index
    %3 = vector.load %arg3[%c0, %c0_1] : memref<16x128xf32, #tpu.memory_space<vmem>>, vector<16x128xf32>
    %4 = arith.truncf %3 : vector<16x128xf32> to vector<16x128xbf16>
    %c0_2 = arith.constant 0 : index
    %c0_3 = arith.constant 0 : index
    %5 = vector.load %arg4[%c0_2, %c0_3] : memref<128x512xbf16, #tpu.memory_space<vmem>>, vector<128x512xbf16>
    %cst = arith.constant dense<0.000000e+00> : vector<16x512xf32>
    %6 = tpu.matmul %4, %5, %cst {dimension_numbers = #tpu.dot_dimension_numbers<[1], [0], [0], [1], [0, 0, 1, 1], [], []>} : vector<16x128xbf16>, vector<128x512xbf16>, vector<16x512xf32> -> vector<16x512xf32>
    %7 = vector.extract_strided_slice %6 {offsets = [0, 0], sizes = [16, 256], strides = [1, 1]} : vector<16x512xf32> to vector<16x256xf32>
    %8 = vector.extract_strided_slice %6 {offsets = [0, 256], sizes = [16, 256], strides = [1, 1]} : vector<16x512xf32> to vector<16x256xf32>
    %9 = arith.negf %7 : vector<16x256xf32>
    %10 = math.exp %9 : vector<16x256xf32>
    %cst_4 = arith.constant 1.000000e+00 : f32
    %11 = vector.broadcast %cst_4 : f32 to vector<16x256xf32>
    %12 = arith.addf %11, %10 : vector<16x256xf32>
    %13 = arith.divf %11, %12 : vector<16x256xf32>
    %14 = arith.mulf %7, %13 : vector<16x256xf32>
    %15 = arith.mulf %14, %8 : vector<16x256xf32>
    %c0_5 = arith.constant 0 : index
    %c0_6 = arith.constant 0 : index
    %16 = vector.load %arg7[%c0_5, %c0_6] : memref<16x128xf32, #tpu.memory_space<vmem>>, vector<16x128xf32>
    %17 = arith.truncf %15 : vector<16x256xf32> to vector<16x256xbf16>
    %c0_7 = arith.constant 0 : index
    %c0_8 = arith.constant 0 : index
    %18 = vector.load %arg5[%c0_7, %c0_8] : memref<256x128xbf16, #tpu.memory_space<vmem>>, vector<256x128xbf16>
    %cst_9 = arith.constant dense<0.000000e+00> : vector<16x128xf32>
    %19 = tpu.matmul %17, %18, %cst_9 {dimension_numbers = #tpu.dot_dimension_numbers<[1], [0], [0], [1], [0, 0, 1, 1], [], []>} : vector<16x256xbf16>, vector<256x128xbf16>, vector<16x128xf32> -> vector<16x128xf32>
    %20 = arith.addf %16, %19 : vector<16x128xf32>
    %c0_10 = arith.constant 0 : index
    %c0_11 = arith.constant 0 : index
    %21 = vector.load %arg7[%c0_10, %c0_11] : memref<16x128xf32, #tpu.memory_space<vmem>>, vector<16x128xf32>
    tpu.vector_store %arg7[%c0_10, %c0_11], %20 {strides = array<i32>} : memref<16x128xf32, #tpu.memory_space<vmem>>, vector<16x128xf32>,
    %c0_i32_12 = arith.constant 0 : i32
    %22 = arith.cmpi eq, %arg2, %c0_i32_12 : i32
    %23 = arith.extui %22 : i1 to i32
    %c0_i32_13 = arith.constant 0 : i32
    %24 = arith.cmpi ne, %23, %c0_i32_13 : i32
    scf.if %24 {
      %c0_14 = arith.constant 0 : index
      %c0_15 = arith.constant 0 : index
      %25 = vector.load %arg7[%c0_14, %c0_15] : memref<16x128xf32, #tpu.memory_space<vmem>>, vector<16x128xf32>
      %c0_16 = arith.constant 0 : index
      %c0_17 = arith.constant 0 : index
      %c0_18 = arith.constant 0 : index
      %26 = vector.load %arg6[%c0_16, %c0_17, %c0_18] : memref<1x16x128xf32, #tpu.memory_space<vmem>>, vector<1x16x128xf32>
      %27 = vector.shape_cast %26 : vector<1x16x128xf32> to vector<16x128xf32>
      %28 = vector.shape_cast %25 : vector<16x128xf32> to vector<1x16x128xf32>
      tpu.vector_store %arg6[%c0_16, %c0_17, %c0_18], %28 {strides = array<i32>} : memref<1x16x128xf32, #tpu.memory_space<vmem>>, vector<1x16x128xf32>,
    } else {
    }
    return
  }
  func.func @transform_0(%arg0: i32, %arg1: i32, %arg2: i32) -> (i32, i32) {
    %c0_i32 = arith.constant 0 : i32
    %c0_i32_0 = arith.constant 0 : i32
    return %arg1, %c0_i32 : i32, i32
  }
  func.func @transform_1(%arg0: i32, %arg1: i32, %arg2: i32) -> (i32, i32) {
    %c1_i32 = arith.constant 1 : i32
    %0 = arith.muli %arg0, %c1_i32 : i32
    %1 = arith.addi %0, %arg2 : i32
    %c0_i32 = arith.constant 0 : i32
    %c0_i32_0 = arith.constant 0 : i32
    return %c0_i32, %1 : i32, i32
  }
  func.func @transform_2(%arg0: i32, %arg1: i32, %arg2: i32) -> (i32, i32) {
    %c1_i32 = arith.constant 1 : i32
    %0 = arith.muli %arg0, %c1_i32 : i32
    %1 = arith.addi %0, %arg2 : i32
    %c0_i32 = arith.constant 0 : i32
    %c0_i32_0 = arith.constant 0 : i32
    return %1, %c0_i32 : i32, i32
  }
  func.func @transform_3(%arg0: i32, %arg1: i32, %arg2: i32) -> (i32, i32, i32) {
    %c0_i32 = arith.constant 0 : i32
    %c0_i32_0 = arith.constant 0 : i32
    return %arg0, %arg1, %c0_i32 : i32, i32, i32
  }
}

</mosaic_0001>

<bundles_post_ra>
// kernel: tpu_custom_call.1
= control target key start
LH: loop header
LB: loop body
LE: loop exit
PB: predicated region body
PF: predicated region fallthrough
CT: control target
= control target key end

     0   :  { %8 = vsyncpa [#allocation4], 0  ;;  %s1054_s0 = inlined_call_operand.hbm [shape: f32[16,128], index: 0, kind: input, shape index: {}]   ;;  %s1055_s1 = inlined_call_operand.hbm [shape: bf16[128,512], index: 1, kind: input, shape index: {}]   ;;  %s1056_s2 = inlined_call_operand.hbm [shape: bf16[256,128], index: 2, kind: input, shape index: {}]   ;;  %s1057_s3 = inlined_call_operand.hbm [shape: f32[1,16,128], index: 3, kind: output, shape index: {}]  }
   0x1   :  { %9 = vsyncpa [#allocation7], 0  ;;  %s32_s14 = sshll.u32 %s1055_s1, 4  ;;  %s33_s14 = int_to_ptr.hbm [resolvable:$true] %s32_s14 }
   0x2   :  { %10 = vsyncpa [#allocation5], 0  ;;  %s978_s15 = smov [#allocation6]   ;;  %s15_s19 = sshll.u32 %s1054_s0, 4  ;;  %s16_s19 = int_to_ptr.hbm [resolvable:$true] %s15_s19 }
   0x3   :  { %s34_s16 = sshll.u32 %s978_s15, 4  ;;  %s979_s20 = smov 256   ;;  %s35_s16 = int_to_ptr.vmem [resolvable:$true] %s34_s16 }
   0x4   :  { %s980_s21 = smov 16   ;;  %s981_s22 = smov [#allocation3]  }
   0x5   :  { %40 = dma.hbm_to_vmem [thread:$0]  %s33_s14, 4096, %s35_s16, [#allocation7], %s979_s20, %s979_s20, %s980_s21  }
   0x6   :  { %s17_s23 = sshll.u32 %s981_s22, 4  ;;  %s982_s24 = smov 128   ;;  %s18_s23 = int_to_ptr.vmem [resolvable:$true] %s17_s23 }
   0x7   :  { %s983_s25 = smov 8   ;;  %s49_s27 = sshll.u32 %s1056_s2, 4  ;;  %s50_s27 = int_to_ptr.hbm [resolvable:$true] %s49_s27 }
   0x8   :  { %23 = dma.hbm_to_vmem [thread:$0]  %s16_s19, 256, %s18_s23, [#allocation4], %s982_s24, %s982_s24, %s983_s25  }
   0x9   :  { %s984_s28 = smov [#allocation8]   ;;  %s985_s29 = smov 64  }
   0xa   :  { %s51_s0 = sshll.u32 %s984_s28, 4  ;;  %s986_s30 = smov 4   ;;  %s52_s0 = int_to_ptr.vmem [resolvable:$true] %s51_s0 }
   0xb   :  { %57 = dma.hbm_to_vmem [thread:$0]  %s50_s27, 2048, %s52_s0, [#allocation7], %s985_s29, %s985_s29, %s986_s30  }
   0xc   :  { %972 = dma.done.wait [#allocation4], 256  }
   0xd   :  { %973 = vsyncadd [#allocation4], 4294967040 }
   0xe   :  { %974 = dma.done.wait [#allocation7], 6144  }
   0xf   :  { %975 = vsyncadd [#allocation7], 4294961152  ;;  %v720_v0 = vld [vmem:[#allocation6 + $0xe0] sm:$0xf]  ;;  %v832_v1 = vld [vmem:[#allocation6 + $0xec] sm:$0xf0] }
  0x10   :  { %v830_v2 = vld [vmem:[#allocation6 + $0xe4] sm:$0xf]  ;;  %v721_v3 = vor.u32 %v832_v1, %v720_v0  ;;  %v722_v4 = vld [vmem:[#allocation6 + $0xf0] sm:$0xf0]  ;;  %v704_v5 = vld [vmem:[#allocation6 + $0xc0] sm:$0xf] }
  0x11   :  { %v828_v6 = vld [vmem:[#allocation6 + $0xcc] sm:$0xf0]  ;;  %v725_v7 = vor.u32 %v830_v2, %v722_v4  ;;  %v826_v8 = vld [vmem:[#allocation6 + $0xc4] sm:$0xf]  ;;  %v706_v9 = vld [vmem:[#allocation6 + $0xd0] sm:$0xf0] }
  0x12   :  { %275 = vmatpush.bf16.msra.mxu0 %v721_v3  ;;  %v705_v10 = vor.u32 %v828_v6, %v704_v5  ;;  %v709_v11 = vor.u32 %v826_v8, %v706_v9  ;;  %v688_v12 = vld [vmem:[#allocation6 + $0xa0] sm:$0xf]  ;;  %v824_v13 = vld [vmem:[#allocation6 + $0xac] sm:$0xf0]  ;;  %v822_v14 = vld [vmem:[#allocation6 + $0xa4] sm:$0xf] }
  0x13   :  { %289 = vmatpush.bf16.msra.mxu1 %v725_v7  ;;  %v690_v15 = vld [vmem:[#allocation6 + $0xb0] sm:$0xf0]  ;;  %v728_v16 = vld [vmem:[#allocation6 + $0xe8] sm:$0xf]  ;;  %v689_v17 = vor.u32 %v824_v13, %v688_v12  ;;  %v833_v18 = vld [vmem:[#allocation6 + $0xf4] sm:$0xf0] }
  0x14   :  { %v831_v19 = vld [vmem:[#allocation6 + $0xec] sm:$0xf]  ;;  %v730_v20 = vld [vmem:[#allocation6 + $0xf8] sm:$0xf0]  ;;  %v693_v21 = vor.u32 %v822_v14, %v690_v15  ;;  %v672_v22 = vld [vmem:[#allocation6 + $0x80] sm:$0xf]  ;;  %v729_v25 = vor.u32 %v833_v18, %v728_v16 }
  0x15   :  { %v820_v23 = vld [vmem:[#allocation6 + $0x8c] sm:$0xf0]  ;;  %v818_v24 = vld [vmem:[#allocation6 + $0x84] sm:$0xf]  ;;  %v733_v26 = vor.u32 %v831_v19, %v730_v20  ;;  %v674_v27 = vld [vmem:[#allocation6 + $0x90] sm:$0xf0] }
  0x16   :  { %276 = vmatpush.bf16.msra.mxu0 %v705_v10  ;;  %v712_v28 = vld [vmem:[#allocation6 + $0xc8] sm:$0xf]  ;;  %v829_v29 = vld [vmem:[#allocation6 + $0xd4] sm:$0xf0]  ;;  %303 = vmatpush.bf16.msra.mxu2 %v729_v25  ;;  %v827_v31 = vld [vmem:[#allocation6 + $0xcc] sm:$0xf]  ;;  %v673_v33 = vor.u32 %v820_v23, %v672_v22  ;;  %v677_v37 = vor.u32 %v818_v24, %v674_v27 }
  0x17   :  { %290 = vmatpush.bf16.msra.mxu1 %v709_v11  ;;  %317 = vmatpush.bf16.msra.mxu3 %v733_v26  ;;  %v713_v30 = vor.u32 %v829_v29, %v712_v28  ;;  %v714_v32 = vld [vmem:[#allocation6 + $0xd8] sm:$0xf0]  ;;  %v656_v34 = vld [vmem:[#allocation6 + $0x60] sm:$0xf]  ;;  %v816_v35 = vld [vmem:[#allocation6 + $0x6c] sm:$0xf0] }
  0x18   :  { %v717_v36 = vor.u32 %v827_v31, %v714_v32  ;;  %v696_v38 = vld [vmem:[#allocation6 + $0xa8] sm:$0xf]  ;;  %v825_v39 = vld [vmem:[#allocation6 + $0xb4] sm:$0xf0]  ;;  %v823_v40 = vld [vmem:[#allocation6 + $0xac] sm:$0xf]  ;;  %v657_v47 = vor.u32 %v816_v35, %v656_v34 }
  0x19   :  { %v814_v41 = vld [vmem:[#allocation6 + $0x64] sm:$0xf]  ;;  %v658_v42 = vld [vmem:[#allocation6 + $0x70] sm:$0xf0]  ;;  %v698_v43 = vld [vmem:[#allocation6 + $0xb8] sm:$0xf0]  ;;  %v697_v44 = vor.u32 %v825_v39, %v696_v38 }
  0x1a   :  { %277 = vmatpush.bf16.msra.mxu0 %v689_v17  ;;  %304 = vmatpush.bf16.msra.mxu2 %v713_v30  ;;  %v701_v45 = vor.u32 %v823_v40, %v698_v43  ;;  %v680_v46 = vld [vmem:[#allocation6 + $0x88] sm:$0xf]  ;;  %v821_v48 = vld [vmem:[#allocation6 + $0x94] sm:$0xf0]  ;;  %v819_v49 = vld [vmem:[#allocation6 + $0x8c] sm:$0xf]  ;;  %v661_v51 = vor.u32 %v814_v41, %v658_v42 }
  0x1b   :  { %291 = vmatpush.bf16.msra.mxu1 %v693_v21  ;;  %318 = vmatpush.bf16.msra.mxu3 %v717_v36  ;;  %v682_v50 = vld [vmem:[#allocation6 + $0x98] sm:$0xf0]  ;;  %v640_v52 = vld [vmem:[#allocation6 + $0x40] sm:$0xf]  ;;  %v812_v53 = vld [vmem:[#allocation6 + $0x4c] sm:$0xf0]  ;;  %v681_v56 = vor.u32 %v821_v48, %v680_v46 }
  0x1c   :  { %v810_v54 = vld [vmem:[#allocation6 + $0x44] sm:$0xf]  ;;  %v642_v55 = vld [vmem:[#allocation6 + $0x50] sm:$0xf0]  ;;  %v685_v57 = vor.u32 %v819_v49, %v682_v50  ;;  %v664_v58 = vld [vmem:[#allocation6 + $0x68] sm:$0xf]  ;;  %v641_v59 = vor.u32 %v812_v53, %v640_v52 }
  0x1d   :  { %v817_v60 = vld [vmem:[#allocation6 + $0x74] sm:$0xf0]  ;;  %v815_v61 = vld [vmem:[#allocation6 + $0x6c] sm:$0xf]  ;;  %v666_v62 = vld [vmem:[#allocation6 + $0x78] sm:$0xf0]  ;;  %v645_v63 = vor.u32 %v810_v54, %v642_v55 }
  0x1e   :  { %278 = vmatpush.bf16.msra.mxu0 %v673_v33  ;;  %305 = vmatpush.bf16.msra.mxu2 %v697_v44  ;;  %v624_v0 = vld [vmem:[#allocation6 + $0x20] sm:$0xf]  ;;  %v808_v1 = vld [vmem:[#allocation6 + $0x2c] sm:$0xf0]  ;;  %v806_v2 = vld [vmem:[#allocation6 + $0x24] sm:$0xf]  ;;  %v665_v4 = vor.u32 %v817_v60, %v664_v58  ;;  %v669_v5 = vor.u32 %v815_v61, %v666_v62 }
  0x1f   :  { %292 = vmatpush.bf16.msra.mxu1 %v677_v37  ;;  %319 = vmatpush.bf16.msra.mxu3 %v701_v45  ;;  %v626_v3 = vld [vmem:[#allocation6 + $0x30] sm:$0xf0]  ;;  %v648_v6 = vld [vmem:[#allocation6 + $0x48] sm:$0xf]  ;;  %v625_v7 = vor.u32 %v808_v1, %v624_v0  ;;  %v813_v8 = vld [vmem:[#allocation6 + $0x54] sm:$0xf0] }
  0x20   :  { %v811_v9 = vld [vmem:[#allocation6 + $0x4c] sm:$0xf]  ;;  %v650_v10 = vld [vmem:[#allocation6 + $0x58] sm:$0xf0]  ;;  %v629_v11 = vor.u32 %v806_v2, %v626_v3  ;;  %v608_v12 = vld [vmem:[#allocation6] sm:$0xf]  ;;  %v649_v17 = vor.u32 %v813_v8, %v648_v6 }
  0x21   :  { %v804_v13 = vld [vmem:[#allocation6 + $0xc] sm:$0xf0]  ;;  %v802_v14 = vld [vmem:[#allocation6 + $0x4] sm:$0xf]  ;;  %v610_v15 = vld [vmem:[#allocation6 + $0x10] sm:$0xf0]  ;;  %v653_v18 = vor.u32 %v811_v9, %v650_v10 }
  0x22   :  { %279 = vmatpush.bf16.msra.mxu0 %v657_v47  ;;  %306 = vmatpush.bf16.msra.mxu2 %v681_v56  ;;  %v80_v16 = vld [vmem:[#allocation3] sm:$0xff]  ;;  %v609_v19 = vor.u32 %v804_v13, %v608_v12  ;;  %v81_v20 = vld [vmem:[#allocation3 + $0x8] sm:$0xff]  ;;  %v632_v21 = vld [vmem:[#allocation6 + $0x28] sm:$0xf]  ;;  %v613_v23 = vor.u32 %v802_v14, %v610_v15  ;;  %s987_s2 = smov [#allocation9]   ;;  %s592_s7 = sshll.u32 %s1057_s3, 4  ;;  %s593_s7 = int_to_ptr.hbm [resolvable:$true] %s592_s7 }
  0x23   :  { %293 = vmatpush.bf16.msra.mxu1 %v661_v51  ;;  %320 = vmatpush.bf16.msra.mxu3 %v685_v57  ;;  %v809_v22 = vld [vmem:[#allocation6 + $0x34] sm:$0xf0]  ;;  %v807_v24 = vld [vmem:[#allocation6 + $0x2c] sm:$0xf]  ;;  %v634_v25 = vld [vmem:[#allocation6 + $0x38] sm:$0xf0]  ;;  %v82_v26 = vpack.c.bf16 %v81_v20, %v80_v16 }
  0x24   :  { %v633_v27 = vor.u32 %v809_v22, %v632_v21  ;;  %v637_v28 = vor.u32 %v807_v24, %v634_v25  ;;  %v616_v29 = vld [vmem:[#allocation6 + $0x8] sm:$0xf]  ;;  %v805_v30 = vld [vmem:[#allocation6 + $0x14] sm:$0xf0]  ;;  %v803_v31 = vld [vmem:[#allocation6 + $0xc] sm:$0xf] }
  0x25   :  { %v618_v32 = vld [vmem:[#allocation6 + $0x18] sm:$0xf0]  ;;  %v617_v33 = vor.u32 %v805_v30, %v616_v29  ;;  %v840_v37 = vld [vmem:[#allocation8 + $0x30] sm:$0xff]  ;;  %v839_v39 = vld [vmem:[#allocation8 + $0x28] sm:$0xff]  ;;  %s590_s4 = sshll.u32 %s987_s2, 4  ;;  %s591_s4 = int_to_ptr.vmem [resolvable:$true] %s590_s4 }
  0x26   :  { %280 = vmatpush.bf16.msra.mxu0 %v641_v59  ;;  %307 = vmatpush.bf16.msra.mxu2 %v665_v4  ;;  %v621_v34 = vor.u32 %v803_v31, %v618_v32  ;;  %v841_v35 = vld [vmem:[#allocation8 + $0x38] sm:$0xff]  ;;  %v848_v38 = vld [vmem:[#allocation8 + $0x70] sm:$0xff]  ;;  %v847_v40 = vld [vmem:[#allocation8 + $0x68] sm:$0xff] }
  0x27   :  { %294 = vmatpush.bf16.msra.mxu1 %v645_v63  ;;  %321 = vmatpush.bf16.msra.mxu3 %v669_v5  ;;  %v849_v36 = vld [vmem:[#allocation8 + $0x78] sm:$0xff]  ;;  %v838_v41 = vld [vmem:[#allocation8 + $0x20] sm:$0xff]  ;;  %v836_v49 = vld [vmem:[#allocation8 + $0x10] sm:$0xff] }
  0x28   :  { %v846_v42 = vld [vmem:[#allocation8 + $0x60] sm:$0xff]  ;;  %v837_v43 = vld [vmem:[#allocation8 + $0x18] sm:$0xff]  ;;  %v844_v50 = vld [vmem:[#allocation8 + $0x50] sm:$0xff] }
  0x29   :  { %v845_v44 = vld [vmem:[#allocation8 + $0x58] sm:$0xff]  ;;  %v835_v51 = vld [vmem:[#allocation8 + $0x8] sm:$0xff]  ;;  %v834_v60 = vld [vmem:[#allocation8] sm:$0xff] }
  0x2a   :  { %281 = vmatpush.bf16.msra.mxu0 %v625_v7  ;;  %308 = vmatpush.bf16.msra.mxu2 %v649_v17  ;;  %v843_v52 = vld [vmem:[#allocation8 + $0x48] sm:$0xff]  ;;  %v842_v61 = vld [vmem:[#allocation8 + $0x40] sm:$0xff] }
  0x2b   :  { %295 = vmatpush.bf16.msra.mxu1 %v629_v11  ;;  %322 = vmatpush.bf16.msra.mxu3 %v653_v18 }
  0x2e   :  { %282 = vmatpush.bf16.msra.mxu0 %v609_v19  ;;  %309 = vmatpush.bf16.msra.mxu2 %v633_v27 }
  0x2f   :  { %296 = vmatpush.bf16.msra.mxu1 %v613_v23  ;;  %323 = vmatpush.bf16.msra.mxu3 %v637_v28 }
  0x31   :  { %283 = vmatmul.bf16.vlgmr.msra.gmra.mxu0 %v82_v26 }
  0x32   :  { %297 = vmatmul.bf16.vlgmr.msra.gmra.mxu1 %v82_v26  ;;  %310 = vmatpush.bf16.msra.mxu2 %v617_v33 }
  0x33   :  { %324 = vmatpush.bf16.msra.mxu3 %v621_v34  ;;  %547 = vmatpush.bf16.msrb.mxu0 %v841_v35 }
  0x34   :  { %561 = vmatpush.bf16.msrb.mxu1 %v849_v36 }
  0x35   :  { %311 = vmatmul.bf16.vlgmr.msra.gmra.mxu2 %v82_v26 }
  0x36   :  { %325 = vmatmul.bf16.vlgmr.msra.gmra.mxu3 %v82_v26 }
  0x37   :  { %548 = vmatpush.bf16.msrb.mxu0 %v840_v37 }
  0x38   :  { %562 = vmatpush.bf16.msrb.mxu1 %v848_v38 }
  0x3b   :  { %549 = vmatpush.bf16.msrb.mxu0 %v839_v39 }
  0x3c   :  { %563 = vmatpush.bf16.msrb.mxu1 %v847_v40 }
  0x3f   :  { %550 = vmatpush.bf16.msrb.mxu0 %v838_v41 }
  0x40   :  { %564 = vmatpush.bf16.msrb.mxu1 %v846_v42 }
  0x43   :  { %551 = vmatpush.bf16.msrb.mxu0 %v837_v43 }
  0x44   :  { %565 = vmatpush.bf16.msrb.mxu1 %v845_v44 }
  0x47   :  { %552 = vmatpush.bf16.msrb.mxu0 %v836_v49 }
  0x48   :  { %566 = vmatpush.bf16.msrb.mxu1 %v844_v50 }
  0x4b   :  { %553 = vmatpush.bf16.msrb.mxu0 %v835_v51 }
  0x4c   :  { %567 = vmatpush.bf16.msrb.mxu1 %v843_v52 }
  0x4f   :  { %554 = vmatpush.bf16.msrb.mxu0 %v834_v60 }
  0x50   :  { %568 = vmatpush.bf16.msrb.mxu1 %v842_v61 }
  0xae   :  { %v1020_v45 = vpop.f32.mrf.mxu0 }
  0xaf   :  { %v734_v46 = vmul.f32 -1.442695, %v1020_v45  ;;  %v1023_v47 = vpop.f32.mrf.mxu1 }
  0xb0   :  { %v735_v48 = vmul.f32 -1.442695, %v1023_v47 }
  0xb1   :  { %860 = vpow2.f32 %v734_v46 }
  0xb2   :  { %862 = vpow2.f32 %v735_v48 }
  0xb6   :  { %v1026_v53 = vpop.f32.mrf.mxu0 }
  0xb7   :  { %v861_v54 = vpop.eup %860  ;;  %v736_v55 = vmul.f32 -1.442695, %v1026_v53  ;;  %v1029_v56 = vpop.f32.mrf.mxu1 }
  0xb8   :  { %v863_v57 = vpop.eup %862  ;;  %v343_v58 = vadd.f32 1.0, %v861_v54  ;;  %v737_v59 = vmul.f32 -1.442695, %v1029_v56  ;;  %v312_v19 = vpop.f32.mrf.mxu2 }
  0xb9   :  { %v344_v62 = vadd.f32 1.0, %v863_v57  ;;  %864 = vpow2.f32 %v736_v55  ;;  %v326_v30 = vpop.f32.mrf.mxu3 }
  0xba   :  { %866 = vrcp.f32 %v343_v58  ;;  %v358_v13 = vand.u32 2147483648, %v343_v58  ;;  %vm352_vm1 = vweird.f32 %v343_v58  ;;  %v356_v14 = vand.u32 2147483647, %v343_v58 }
  0xbb   :  { %868 = vrcp.f32 %v344_v62  ;;  %v371_v18 = vand.u32 2147483647, %v344_v62  ;;  %v373_v22 = vand.u32 2147483648, %v344_v62  ;;  %vm367_vm4 = vweird.f32 %v344_v62 }
  0xbc   :  { %870 = vpow2.f32 %v737_v59  ;;  %v359_v24 = vor.u32 1.1754944e-38, %v358_v13  ;;  %vm357_vm5 = vcmp.eq.f32.partialorder %v356_v14, 8.507059e+37 }
  0xbd   :  { %vm372_vm8 = vcmp.eq.f32.partialorder %v371_v18, 8.507059e+37  ;;  %v374_v34 = vor.u32 1.1754944e-38, %v373_v22 }
  0xbf   :  { %v865_v63 = vpop.eup %864 }
  0xc0   :  { %v867_v0 = vpop.eup %866  ;;  %v345_v1 = vadd.f32 1.0, %v865_v63  ;;  %v314_v51 = vpop.f32.mrf.mxu2 }
  0xc1   :  { %v869_v2 = vpop.eup %868  ;;  %v348_v3 = vmul.f32 %v867_v0, %v343_v58  ;;  %vm353_vm0 = vweird.f32 %v867_v0  ;;  %v328_v58 = vpop.f32.mrf.mxu3 }
  0xc2   :  { %v871_v4 = vpop.eup %870  ;;  %v363_v5 = vmul.f32 %v869_v2, %v344_v62  ;;  %872 = vrcp.f32 %v345_v1  ;;  %vm1032_vm2 = vmor %vm352_vm1, %vm353_vm0  ;;  %vm368_vm3 = vweird.f32 %v869_v2  ;;  %v388_v25 = vand.u32 2147483648, %v345_v1 }
  0xc3   :  { %v349_v6 = vsub.f32 1.0, %v348_v3  ;;  %v346_v7 = vadd.f32 1.0, %v871_v4  ;;  %vm1038_vm6 = vmor %vm367_vm4, %vm368_vm3  ;;  %v386_v29 = vand.u32 2147483647, %v345_v1  ;;  %vm382_vm9 = vweird.f32 %v345_v1 }
  0xc4   :  { %v364_v8 = vsub.f32 1.0, %v363_v5  ;;  %v389_v37 = vor.u32 1.1754944e-38, %v388_v25 }
  0xc5   :  { %v350_v9 = vmul.f32 %v867_v0, %v349_v6  ;;  %874 = vrcp.f32 %v346_v7  ;;  %v403_v36 = vand.u32 2147483648, %v346_v7  ;;  %v401_v39 = vand.u32 2147483647, %v346_v7 }
  0xc6   :  { %v365_v10 = vmul.f32 %v869_v2, %v364_v8  ;;  %vm387_vm12 = vcmp.eq.f32.partialorder %v386_v29, 8.507059e+37  ;;  %vm397_vm13 = vweird.f32 %v346_v7 }
  0xc7   :  { %v351_v11 = vadd.f32 %v867_v0, %v350_v9  ;;  %v404_v48 = vor.u32 1.1754944e-38, %v403_v36  ;;  %vm402_vm15 = vcmp.eq.f32.partialorder %v401_v39, 8.507059e+37 }
  0xc8   :  { %v873_v12 = vpop.eup %872  ;;  %v366_v17 = vadd.f32 %v869_v2, %v365_v10 }
  0xc9   :  { %v378_v15 = vmul.f32 %v873_v12, %v345_v1  ;;  %v355_v21 = vsel %vm1032_vm2, %v867_v0, %v351_v11  ;;  %vm383_vm7 = vweird.f32 %v873_v12 }
  0xca   :  { %v360_v31 = vsel %vm357_vm5, %v359_v24, %v355_v21  ;;  %v370_v32 = vsel %vm1038_vm6, %v869_v2, %v366_v17  ;;  %vm384_vm10 = vmor %vm382_vm9, %vm383_vm7 }
  0xcb   :  { %v875_v20 = vpop.eup %874  ;;  %v379_v23 = vsub.f32 1.0, %v378_v15  ;;  %v407_v40 = vmul.f32 %v360_v31, %v1020_v45  ;;  %v375_v41 = vsel %vm372_vm8, %v374_v34, %v370_v32 }
  0xcc   :  { %v393_v26 = vmul.f32 %v875_v20, %v346_v7  ;;  %vm398_vm11 = vweird.f32 %v875_v20  ;;  %v408_v49 = vmul.f32 %v375_v41, %v1023_v47 }
  0xcd   :  { %v380_v28 = vmul.f32 %v873_v12, %v379_v23  ;;  %vm399_vm14 = vmor %vm397_vm13, %vm398_vm11  ;;  %v411_v54 = vmul.f32 %v407_v40, %v312_v19 }
  0xce   :  { %v394_v33 = vsub.f32 1.0, %v393_v26  ;;  %v412_v59 = vmul.f32 %v408_v49, %v326_v30 }
  0xcf   :  { %v381_v35 = vadd.f32 %v873_v12, %v380_v28 }
  0xd0   :  { %v395_v38 = vmul.f32 %v875_v20, %v394_v33 }
  0xd1   :  { %v385_v42 = vsel %vm384_vm10, %v873_v12, %v381_v35 }
  0xd2   :  { %v390_v43 = vsel %vm387_vm12, %v389_v37, %v385_v42  ;;  %v396_v44 = vadd.f32 %v875_v20, %v395_v38 }
  0xd3   :  { %v409_v46 = vmul.f32 %v390_v43, %v1026_v53 }
  0xd4   :  { %v400_v50 = vsel %vm399_vm14, %v875_v20, %v396_v44 }
  0xd5   :  { %v405_v52 = vsel %vm402_vm15, %v404_v48, %v400_v50  ;;  %v413_v55 = vmul.f32 %v409_v46, %v314_v51 }
  0xd6   :  { %v410_v45 = vmul.f32 %v405_v52, %v1029_v56 }
  0xd7   :  { %v417_v57 = vpack.c.bf16 %v413_v55, %v411_v54 }
  0xd8   :  { %v414_v60 = vmul.f32 %v410_v45, %v328_v58 }
  0xd9   :  { %555 = vmatmul.bf16.vlgmr.msrb.gmra.mxu0 %v417_v57 }
  0xda   :  { %v418_v61 = vpack.c.bf16 %v414_v60, %v412_v59 }
  0xdc   :  { %569 = vmatmul.bf16.vlgmr.msrb.gmra.mxu1 %v418_v61 }
 0x156   :  { %v556_v53 = vpop.f32.mrf.mxu0 }
 0x159   :  { %v570_v62 = vpop.f32.mrf.mxu1 }
 0x15a   :  { %v571_v63 = vadd.f32 %v570_v62, %v556_v53 }
 0x15c   :  { %584 = vst [vmem:[#allocation9] sm:$0xff] %v571_v63 }
 0x15e   :  { %v558_v47 = vpop.f32.mrf.mxu0 }
 0x161   :  { %v572_v0 = vpop.f32.mrf.mxu1 }
 0x162   :  { %v573_v56 = vadd.f32 %v572_v0, %v558_v47 }
 0x164   :  { %585 = vst [vmem:[#allocation9 + $0x8] sm:$0xff] %v573_v56 }
 0x165   :  { %598 = dma.vmem_to_hbm [thread:$0]  %s591_s4, 256, %s593_s7, [#allocation5], %s982_s24, %s982_s24, %s983_s25  }
 0x166   :  { %976 = dma.done.wait [#allocation5], 256  }
 0x167   :  { %977 = vsyncadd [#allocation5], 4294967040 }
 0x168   :  { %603 = vsyncpa [#allocation4], 1 }
 0x169   :  { %604 = vsyncpa [#allocation7], 1 }
 0x16a   :  { %605 = vsyncpa [#allocation5], 1 }

</bundles_post_ra>
